<compile_context>
chip_gen: v5e
topology: v5e:2x2
jax: 0.10.0
libtpu: 0.0.40
codegen_flags: <defaults>
</compile_context>

<pallas_src>
import jax
import jax.numpy as jnp
from jax.experimental import pallas as pl
from jax.experimental.pallas import tpu as pltpu

N_ROWS, N_COLS, N_OPS = 3, 3, 4
N_ACTIONS = N_ROWS * N_COLS * N_OPS + 1  # 37
INP = 72
H1 = 128
H2 = 64
H2P = 128          # H2 zero-padded to a full lane width for lane-dense intermediates
MAX_TB = 4096      # batch tile cap (multiple of 8); ~7 MiB of VMEM at this size


def _qnet_kernel(x_ref, w1_ref, b1_ref, w2_ref, b2_ref, w3_ref, b3_ref, o_ref):
    # x tile: (tb, 72) f32 -> cast to bf16 in-kernel (VPU pack, plenty of slack).
    x = x_ref[...].astype(jnp.bfloat16)

    # Linear(72 -> 128) + ReLU   (MXU bf16 matmul, f32 accumulate, f32 epilogue)
    h1 = jnp.dot(x, w1_ref[...], preferred_element_type=jnp.float32) + b1_ref[...]
    h1 = jnp.maximum(h1, 0.0).astype(jnp.bfloat16)

    # Linear(128 -> 128) + ReLU  (upper 64 columns are exactly zero by construction)
    h2 = jnp.dot(h1, w2_ref[...], preferred_element_type=jnp.float32) + b2_ref[...]
    h2 = jnp.maximum(h2, 0.0).astype(jnp.bfloat16)

    # Linear(128 -> 37)          (padded K rows of w3 are zero; output is the real width)
    out = jnp.dot(h2, w3_ref[...], preferred_element_type=jnp.float32) + b3_ref[...]
    o_ref[...] = out.astype(o_ref.dtype)


def pack_params(params):
    """Cast weights to bf16; pad only the hidden (H2) dim to 128. Biases stay f32."""
    w1 = params["w1"].astype(jnp.bfloat16)                                            # (72, 128)
    b1 = params["b1"].astype(jnp.float32)                                             # (1, 128)
    w2 = jnp.zeros((H1, H2P), jnp.float32).at[:, :H2].set(params["w2"]).astype(jnp.bfloat16)
    b2 = jnp.zeros((1, H2P), jnp.float32).at[:, :H2].set(params["b2"])
    w3 = jnp.zeros((H2P, N_ACTIONS), jnp.float32).at[:H2, :].set(params["w3"]).astype(jnp.bfloat16)
    b3 = params["b3"].astype(jnp.float32)                                             # (1, 37)
    return (w1, b1, w2, b2, w3, b3)


def _choose_tb(B: int) -> int:
    """Batch tile: multiple of 8; >=2 grid steps for large B (v7x megacore)."""
    b8 = ((B + 7) // 8) * 8
    if b8 <= 512:
        return min(b8, MAX_TB)
    half = ((pl.cdiv(B, 2) + 7) // 8) * 8     # split into >=2 tiles, keep tiles >=256 rows
    return max(256, min(MAX_TB, half))


def qnet_forward(x, packed):
    """x: (B, INP) float32. packed: output of pack_params. Returns (B, N_ACTIONS) f32."""
    w1, b1, w2, b2, w3, b3 = packed
    B = x.shape[0]
    tb = _choose_tb(B)
    grid = (pl.cdiv(B, tb),)                  # ragged last block handled by Pallas masking

    x_spec = pl.BlockSpec((tb, INP), lambda i: (i, 0))              # 72 == full last dim
    out_spec = pl.BlockSpec((tb, N_ACTIONS), lambda i: (i, 0))      # 37 == full last dim
    resident = lambda a: pl.BlockSpec(a.shape, lambda i: (0, 0))    # same block every step

    return pl.pallas_call(
        _qnet_kernel,
        out_shape=jax.ShapeDtypeStruct((B, N_ACTIONS), jnp.float32),
        grid=grid,
        in_specs=[x_spec, resident(w1), resident(b1), resident(w2),
                  resident(b2), resident(w3), resident(b3)],
        out_specs=out_spec,
        compiler_params=pltpu.CompilerParams(
            dimension_semantics=("parallel",),
        ),
    )(x, w1, b1, w2, b2, w3, b3)


def init_params(key):
    """PyTorch-default-style Linear init. Weights stored transposed: (in, out)."""
    def linear(key, fan_in, fan_out):
        kw, kb = jax.random.split(key)
        bound = 1.0 / jnp.sqrt(fan_in)
        w = jax.random.uniform(kw, (fan_in, fan_out), jnp.float32, -bound, bound)
        b = jax.random.uniform(kb, (1, fan_out), jnp.float32, -bound, bound)
        return w, b

    k1, k2, k3 = jax.random.split(key, 3)
    w1, b1 = linear(k1, INP, H1)
    w2, b2 = linear(k2, H1, H2)
    w3, b3 = linear(k3, H2, N_ACTIONS)
    return {"w1": w1, "b1": b1, "w2": w2, "b2": b2, "w3": w3, "b3": b3}


def qnet_reference_f32(x, params):
    """Pure f32 reference (matches the PyTorch module exactly)."""
    h1 = jnp.maximum(x @ params["w1"] + params["b1"], 0.0)
    h2 = jnp.maximum(h1 @ params["w2"] + params["b2"], 0.0)
    return h2 @ params["w3"] + params["b3"]


def qnet_reference_bf16(x, params):
    """Reference mirroring the kernel's bf16-input / f32-accumulate numerics."""
    xb = x.astype(jnp.bfloat16)
    w1 = params["w1"].astype(jnp.bfloat16)
    w2 = params["w2"].astype(jnp.bfloat16)
    w3 = params["w3"].astype(jnp.bfloat16)
    h1 = jnp.maximum(jnp.dot(xb, w1, preferred_element_type=jnp.float32) + params["b1"], 0.0)
    h2 = jnp.maximum(jnp.dot(h1.astype(jnp.bfloat16), w2, preferred_element_type=jnp.float32)
                     + params["b2"], 0.0)
    return jnp.dot(h2.astype(jnp.bfloat16), w3, preferred_element_type=jnp.float32) + params["b3"]


if __name__ == "__main__":
    key = jax.random.PRNGKey(0)
    kx, kp = jax.random.split(key)

    B = 8
    x = jax.random.normal(kx, (B, INP), dtype=jnp.float32)
    params = init_params(kp)
    packed = pack_params(params)

    out = qnet_forward(x, packed)
    out = jax.block_until_ready(out)

    assert out.shape == (B, N_ACTIONS), out.shape
    # Strict check vs a reference using the same bf16-input / f32-accumulate numerics.
    ref_bf16 = qnet_reference_bf16(x, params)
    assert jnp.allclose(out, ref_bf16, atol=1e-3, rtol=1e-3), "mismatch vs bf16 reference"
    # Sanity check vs the exact f32 PyTorch-equivalent forward (bf16 quantization noise).
    ref_f32 = qnet_reference_f32(x, params)
    assert jnp.allclose(out, ref_f32, atol=3e-2, rtol=3e-2), "mismatch vs f32 reference"

    # Also exercise a ragged, multi-tile batch path (unpadded grid, masked last block).
    B2 = 1037
    x2 = jax.random.normal(kx, (B2, INP), dtype=jnp.float32)
    out2 = jax.block_until_ready(qnet_forward(x2, packed))
    assert out2.shape == (B2, N_ACTIONS), out2.shape
    ref2 = qnet_reference_bf16(x2, params)
    assert jnp.allclose(out2, ref2, atol=1e-3, rtol=1e-3), "mismatch on ragged batch"

    print("KERNEL_OK")
</pallas_src>

<mosaic_0001>
module attributes {stable_mosaic.version = 11 : i64} {
  func.func @_qnet_kernel(%arg0: i32, %arg1: memref<8x72xf32, #tpu.memory_space<vmem>>, %arg2: memref<72x128xbf16, #tpu.memory_space<vmem>>, %arg3: memref<1x128xf32, #tpu.memory_space<vmem>>, %arg4: memref<128x128xbf16, #tpu.memory_space<vmem>>, %arg5: memref<1x128xf32, #tpu.memory_space<vmem>>, %arg6: memref<128x37xbf16, #tpu.memory_space<vmem>>, %arg7: memref<1x37xf32, #tpu.memory_space<vmem>>, %arg8: memref<8x37xf32, #tpu.memory_space<vmem>>) attributes {dimension_semantics = [#tpu.dimension_semantics<parallel>], iteration_bounds = array<i64: 1>, scalar_prefetch = 0 : i64, scratch_operands = 0 : i64, tpu.core_type = #tpu.core_type<tc>, window_params = [{transform_indices = @transform_0, window_bounds = array<i64: 8, 72>}, {pipeline_mode = #tpu.pipeline_mode<synchronous>, transform_indices = @transform_1, window_bounds = array<i64: 72, 128>}, {pipeline_mode = #tpu.pipeline_mode<synchronous>, transform_indices = @transform_2, window_bounds = array<i64: 1, 128>}, {pipeline_mode = #tpu.pipeline_mode<synchronous>, transform_indices = @transform_3, window_bounds = array<i64: 128, 128>}, {pipeline_mode = #tpu.pipeline_mode<synchronous>, transform_indices = @transform_4, window_bounds = array<i64: 1, 128>}, {pipeline_mode = #tpu.pipeline_mode<synchronous>, transform_indices = @transform_5, window_bounds = array<i64: 128, 37>}, {pipeline_mode = #tpu.pipeline_mode<synchronous>, transform_indices = @transform_6, window_bounds = array<i64: 1, 37>}, {transform_indices = @transform_7, window_bounds = array<i64: 8, 37>}]} {
    %c0 = arith.constant 0 : index
    %c0_0 = arith.constant 0 : index
    %0 = vector.load %arg1[%c0, %c0_0] : memref<8x72xf32, #tpu.memory_space<vmem>>, vector<8x72xf32>
    %1 = arith.truncf %0 : vector<8x72xf32> to vector<8x72xbf16>
    %c0_1 = arith.constant 0 : index
    %c0_2 = arith.constant 0 : index
    %2 = vector.load %arg2[%c0_1, %c0_2] : memref<72x128xbf16, #tpu.memory_space<vmem>>, vector<72x128xbf16>
    %cst = arith.constant dense<0.000000e+00> : vector<8x128xf32>
    %3 = tpu.matmul %1, %2, %cst {dimension_numbers = #tpu.dot_dimension_numbers<[1], [0], [0], [1], [0, 0, 1, 1], [], []>} : vector<8x72xbf16>, vector<72x128xbf16>, vector<8x128xf32> -> vector<8x128xf32>
    %c0_3 = arith.constant 0 : index
    %c0_4 = arith.constant 0 : index
    %4 = vector.load %arg3[%c0_3, %c0_4] : memref<1x128xf32, #tpu.memory_space<vmem>>, vector<1x128xf32>
    %5 = vector.broadcast %4 : vector<1x128xf32> to vector<8x128xf32>
    %6 = arith.addf %3, %5 : vector<8x128xf32>
    %cst_5 = arith.constant 0.000000e+00 : f32
    %7 = vector.broadcast %cst_5 : f32 to vector<8x128xf32>
    %8 = arith.maximumf %6, %7 : vector<8x128xf32>
    %9 = arith.truncf %8 : vector<8x128xf32> to vector<8x128xbf16>
    %c0_6 = arith.constant 0 : index
    %c0_7 = arith.constant 0 : index
    %10 = vector.load %arg4[%c0_6, %c0_7] : memref<128x128xbf16, #tpu.memory_space<vmem>>, vector<128x128xbf16>
    %cst_8 = arith.constant dense<0.000000e+00> : vector<8x128xf32>
    %11 = tpu.matmul %9, %10, %cst_8 {dimension_numbers = #tpu.dot_dimension_numbers<[1], [0], [0], [1], [0, 0, 1, 1], [], []>} : vector<8x128xbf16>, vector<128x128xbf16>, vector<8x128xf32> -> vector<8x128xf32>
    %c0_9 = arith.constant 0 : index
    %c0_10 = arith.constant 0 : index
    %12 = vector.load %arg5[%c0_9, %c0_10] : memref<1x128xf32, #tpu.memory_space<vmem>>, vector<1x128xf32>
    %13 = vector.broadcast %12 : vector<1x128xf32> to vector<8x128xf32>
    %14 = arith.addf %11, %13 : vector<8x128xf32>
    %cst_11 = arith.constant 0.000000e+00 : f32
    %15 = vector.broadcast %cst_11 : f32 to vector<8x128xf32>
    %16 = arith.maximumf %14, %15 : vector<8x128xf32>
    %17 = arith.truncf %16 : vector<8x128xf32> to vector<8x128xbf16>
    %c0_12 = arith.constant 0 : index
    %c0_13 = arith.constant 0 : index
    %18 = vector.load %arg6[%c0_12, %c0_13] : memref<128x37xbf16, #tpu.memory_space<vmem>>, vector<128x37xbf16>
    %cst_14 = arith.constant dense<0.000000e+00> : vector<8x37xf32>
    %19 = tpu.matmul %17, %18, %cst_14 {dimension_numbers = #tpu.dot_dimension_numbers<[1], [0], [0], [1], [0, 0, 1, 1], [], []>} : vector<8x128xbf16>, vector<128x37xbf16>, vector<8x37xf32> -> vector<8x37xf32>
    %c0_15 = arith.constant 0 : index
    %c0_16 = arith.constant 0 : index
    %20 = vector.load %arg7[%c0_15, %c0_16] : memref<1x37xf32, #tpu.memory_space<vmem>>, vector<1x37xf32>
    %21 = vector.broadcast %20 : vector<1x37xf32> to vector<8x37xf32>
    %22 = arith.addf %19, %21 : vector<8x37xf32>
    %c0_17 = arith.constant 0 : index
    %c0_18 = arith.constant 0 : index
    %23 = vector.load %arg8[%c0_17, %c0_18] : memref<8x37xf32, #tpu.memory_space<vmem>>, vector<8x37xf32>
    tpu.vector_store %arg8[%c0_17, %c0_18], %22 {strides = array<i32>} : memref<8x37xf32, #tpu.memory_space<vmem>>, vector<8x37xf32>,
    return
  }
  func.func @transform_0(%arg0: i32) -> (i32, i32) {
    %c0_i32 = arith.constant 0 : i32
    %c0_i32_0 = arith.constant 0 : i32
    return %arg0, %c0_i32 : i32, i32
  }
  func.func @transform_1(%arg0: i32) -> (i32, i32) {
    %c0_i32 = arith.constant 0 : i32
    %c0_i32_0 = arith.constant 0 : i32
    %c0_i32_1 = arith.constant 0 : i32
    return %c0_i32, %c0_i32_0 : i32, i32
  }
  func.func @transform_2(%arg0: i32) -> (i32, i32) {
    %c0_i32 = arith.constant 0 : i32
    %c0_i32_0 = arith.constant 0 : i32
    %c0_i32_1 = arith.constant 0 : i32
    return %c0_i32, %c0_i32_0 : i32, i32
  }
  func.func @transform_3(%arg0: i32) -> (i32, i32) {
    %c0_i32 = arith.constant 0 : i32
    %c0_i32_0 = arith.constant 0 : i32
    %c0_i32_1 = arith.constant 0 : i32
    return %c0_i32, %c0_i32_0 : i32, i32
  }
  func.func @transform_4(%arg0: i32) -> (i32, i32) {
    %c0_i32 = arith.constant 0 : i32
    %c0_i32_0 = arith.constant 0 : i32
    %c0_i32_1 = arith.constant 0 : i32
    return %c0_i32, %c0_i32_0 : i32, i32
  }
  func.func @transform_5(%arg0: i32) -> (i32, i32) {
    %c0_i32 = arith.constant 0 : i32
    %c0_i32_0 = arith.constant 0 : i32
    %c0_i32_1 = arith.constant 0 : i32
    return %c0_i32, %c0_i32_0 : i32, i32
  }
  func.func @transform_6(%arg0: i32) -> (i32, i32) {
    %c0_i32 = arith.constant 0 : i32
    %c0_i32_0 = arith.constant 0 : i32
    %c0_i32_1 = arith.constant 0 : i32
    return %c0_i32, %c0_i32_0 : i32, i32
  }
  func.func @transform_7(%arg0: i32) -> (i32, i32) {
    %c0_i32 = arith.constant 0 : i32
    %c0_i32_0 = arith.constant 0 : i32
    return %arg0, %c0_i32 : i32, i32
  }
}

</mosaic_0001>

<bundles_post_ra>
// kernel: tpu_custom_call.1
= control target key start
LH: loop header
LB: loop body
LE: loop exit
PB: predicated region body
PF: predicated region fallthrough
CT: control target
= control target key end

     0   :  { %12 = vsyncpa [#allocation3], 0  ;;  %s562_s0 = inlined_call_operand.vmem [shape: f32[8,72], index: 0, kind: input, shape index: {}]   ;;  %s563_s1 = inlined_call_operand.hbm [shape: bf16[72,128], index: 1, kind: input, shape index: {}]   ;;  %s564_s2 = inlined_call_operand.vmem [shape: f32[1,128], index: 2, kind: input, shape index: {}]   ;;  %s565_s3 = inlined_call_operand.vmem [shape: bf16[128,128], index: 3, kind: input, shape index: {}]   ;;  %s566_s4 = inlined_call_operand.vmem [shape: f32[1,128], index: 4, kind: input, shape index: {}]   ;;  %s567_s5 = inlined_call_operand.vmem [shape: bf16[128,37], index: 5, kind: input, shape index: {}]   ;;  %s568_s6 = inlined_call_operand.vmem [shape: f32[1,37], index: 6, kind: input, shape index: {}]   ;;  %s569_s7 = inlined_call_operand.hbm [shape: f32[8,37], index: 7, kind: output, shape index: {}]  }
   0x1   :  { %13 = vsyncpa [#allocation4], 0  ;;  %s20_s26 = sshll.u32 %s563_s1, 4  ;;  %s452_s27 = smov [#allocation2]   ;;  %s21_s26 = int_to_ptr.hbm [resolvable:$true] %s20_s26 }
   0x2   :  { %s22_s28 = sshll.u32 %s452_s27, 4  ;;  %s453_s29 = smov 64   ;;  %s23_s28 = int_to_ptr.vmem [resolvable:$true] %s22_s28 }
   0x3   :  { %s454_s30 = smov 4  }
   0x4   :  { %28 = dma.hbm_to_vmem [thread:$0]  %s21_s26, 576, %s23_s28, [#allocation3], %s453_s29, %s453_s29, %s454_s30  }
   0x5   :  { %448 = dma.done.wait [#allocation3], 576  }
   0x6   :  { %449 = vsyncadd [#allocation3], 4294966720  ;;  %v54_v0 = vld [vmem:[#allocation2 + $0x20] sm:$0xf]  ;;  %vm90_vm0 = vcmask 1043456   ;;  %v384_v2 = vld [vmem:[%s565_s3 + $0x38] sm:$0xff] }
   0x7   :  { %v76_v1 = vunpack.c.l.b16 %v54_v0  ;;  %177 = vmatpush.bf16.msra.mxu1 %v384_v2  ;;  %v383_v4 = vld [vmem:[%s565_s3 + $0x30] sm:$0xff]  ;;  %v376_v6 = vld [vmem:[#allocation2 + $0x18] sm:$0xff]  ;;  %v382_v7 = vld [vmem:[%s565_s3 + $0x28] sm:$0xff]  ;;  %vm86_vm1 = vcmask 588800   ;;  %s455_s20 = smov [#allocation5]   ;;  %vm273_vm2 = vcmask 302080  }
   0x8   :  { %v375_v8 = vld [vmem:[#allocation2 + $0x10] sm:$0xff]  ;;  %v381_v9 = vld [vmem:[%s565_s3 + $0x20] sm:$0xff]  ;;  %v374_v10 = vld [vmem:[#allocation2 + $0x8] sm:$0xff]  ;;  %s280_s21 = sshll.u32 %s455_s20, 4  ;;  %s281_s21 = int_to_ptr.vmem [resolvable:$true] %s280_s21 }
   0x9   :  { %v81_v3 = vpack.c.b16 %v76_v1, %v76_v1  ;;  %v380_v11 = vld [vmem:[%s565_s3 + $0x18] sm:$0xff]  ;;  %v373_v12 = vld [vmem:[#allocation2] sm:$0xff]  ;;  %v379_v14 = vld [vmem:[%s565_s3 + $0x10] sm:$0xff] }
   0xa   :  { %v44_v13 = vld [vmem:[%s562_s0] sm:$0xff]  ;;  %v378_v16 = vld [vmem:[%s565_s3 + $0x8] sm:$0xff]  ;;  %v392_v18 = vld [vmem:[%s567_s5 + $0x38] sm:$0xff] }
   0xb   :  { %v92_v5 = vsel %vm90_vm0, %v81_v3, 0  ;;  %178 = vmatpush.bf16.msra.mxu1 %v383_v4  ;;  %v45_v15 = vpack.c.bf16 %v44_v13, %v44_v13  ;;  %v377_v17 = vld [vmem:[%s565_s3] sm:$0xff]  ;;  %260 = vmatpush.bf16.msra.mxu2 %v392_v18  ;;  %v391_v19 = vld [vmem:[%s567_s5 + $0x30] sm:$0xff]  ;;  %v390_v20 = vld [vmem:[%s567_s5 + $0x28] sm:$0xff] }
   0xc   :  { %97 = vmatpush.bf16.msra.mxu0 %v92_v5  ;;  %v389_v21 = vld [vmem:[%s567_s5 + $0x20] sm:$0xff]  ;;  %v388_v22 = vld [vmem:[%s567_s5 + $0x18] sm:$0xff]  ;;  %v387_v23 = vld [vmem:[%s567_s5 + $0x10] sm:$0xff] }
   0xd   :  { %v397_v24 = vld [vmem:[%s564_s2] ss:$0 sm:$0xff]  ;;  %v386_v30 = vld [vmem:[%s567_s5 + $0x8] sm:$0xff] }
   0xe   :  { %v385_v31 = vld [vmem:[%s567_s5] sm:$0xff]  ;;  %s282_s5 = sshll.u32 %s569_s7, 4  ;;  %s283_s5 = int_to_ptr.hbm [resolvable:$true] %s282_s5 }
   0xf   :  { %179 = vmatpush.bf16.msra.mxu1 %v382_v7  ;;  %261 = vmatpush.bf16.msra.mxu2 %v391_v19  ;;  %v398_v32 = vld [vmem:[%s566_s4] ss:$0 sm:$0xff] }
  0x10   :  { %98 = vmatpush.bf16.msra.mxu0 %v376_v6  ;;  %v399_v38 = vld [vmem:[%s568_s6] ss:$0 sm:$0xff] }
  0x13   :  { %180 = vmatpush.bf16.msra.mxu1 %v381_v9  ;;  %262 = vmatpush.bf16.msra.mxu2 %v390_v20 }
  0x14   :  { %99 = vmatpush.bf16.msra.mxu0 %v375_v8 }
  0x17   :  { %181 = vmatpush.bf16.msra.mxu1 %v380_v11  ;;  %263 = vmatpush.bf16.msra.mxu2 %v389_v21 }
  0x18   :  { %100 = vmatpush.bf16.msra.mxu0 %v374_v10 }
  0x1b   :  { %182 = vmatpush.bf16.msra.mxu1 %v379_v14  ;;  %264 = vmatpush.bf16.msra.mxu2 %v388_v22 }
  0x1c   :  { %101 = vmatpush.bf16.msra.mxu0 %v373_v12 }
  0x1f   :  { %308 = vmatmul.msk.bf16.vlgmr.msra.gmra.mxu0 %vm86_vm1, %v45_v15  ;;  %183 = vmatpush.bf16.msra.mxu1 %v378_v16 }
  0x20   :  { %265 = vmatpush.bf16.msra.mxu2 %v387_v23 }
  0x23   :  { %184 = vmatpush.bf16.msra.mxu1 %v377_v17 }
  0x24   :  { %266 = vmatpush.bf16.msra.mxu2 %v386_v30 }
  0x28   :  { %267 = vmatpush.bf16.msra.mxu2 %v385_v31 }
  0x9c   :  { %v103_v25 = vpop.f32.mrf.mxu0 }
  0x9d   :  { %v104_v26 = vadd.f32 %v397_v24, %v103_v25 }
  0x9f   :  { %v107_v27 = vmax.f32 %v104_v26, 0.0 }
  0xa1   :  { %v108_v28 = vpack.c.bf16 %v107_v27, %v107_v27 }
  0xa3   :  { %185 = vmatmul.bf16.vlgmr.msra.gmra.mxu1 %v108_v28 }
  0xa4   :  { %v105_v29 = vpop.f32.mrf.mxu0 }
 0x120   :  { %v186_v33 = vpop.f32.mrf.mxu1 }
 0x121   :  { %v187_v34 = vadd.f32 %v398_v32, %v186_v33 }
 0x123   :  { %v190_v35 = vmax.f32 %v187_v34, 0.0 }
 0x125   :  { %v191_v36 = vpack.c.bf16 %v190_v35, %v190_v35 }
 0x127   :  { %268 = vmatmul.bf16.vlgmr.msra.gmra.mxu2 %v191_v36 }
 0x128   :  { %v188_v37 = vpop.f32.mrf.mxu1 }
 0x1aa   :  { %v269_v39 = vpop.f32.mrf.mxu2 }
 0x1ab   :  { %v270_v40 = vadd.f32 %v399_v38, %v269_v39 }
 0x1ad   :  { %274 = vst.msk [vmem:[#allocation5] sm:$0xff] %vm273_vm2, %v270_v40 }
 0x1ae   :  { %285 = dma.vmem_to_hbm [thread:$0]  %s281_s21, 128, %s283_s5, [#allocation4]  }
 0x1b2   :  { %v271_v41 = vpop.f32.mrf.mxu2 }
 0x1b3   :  { %450 = dma.done.wait [#allocation4], 128  }
 0x1b4   :  { %451 = vsyncadd [#allocation4], 4294967168 }
 0x1b5   :  { %290 = vsyncpa [#allocation3], 1 }
 0x1b6   :  { %291 = vsyncpa [#allocation4], 1 }

</bundles_post_ra>
